<compile_context>
chip_gen: v7x
topology: tpu7x:2x2x1
jax: 0.10.0
libtpu: 0.0.40
codegen_flags: <defaults>
</compile_context>

<pallas_src>
import jax
import jax.numpy as jnp
from jax.experimental import pallas as pl
from jax.experimental.pallas import tpu as pltpu


def _smask_kernel(x_ref, n_ref, o_ref):
    # o = sigmoid(x) * noisy on one VMEM tile, math in f32.
    # sigmoid(x) == 0.5 * (tanh(x/2) + 1): one EUP op instead of exp + divide.
    x = x_ref[...].astype(jnp.float32)
    n = n_ref[...].astype(jnp.float32)
    s = 0.5 * (jnp.tanh(0.5 * x) + 1.0)
    o_ref[...] = (s * n).astype(o_ref.dtype)


def _pick_lane_width(n: int) -> int:
    # Widest lane-dense last dim (multiple of 128) that divides n exactly.
    for w in (8192, 4096, 2048, 1024, 512, 256, 128):
        if n % w == 0:
            return w
    return 0  # ragged total size: caller splits bulk + tail


def _smask_2d(x2d: jnp.ndarray, n2d: jnp.ndarray, out_dtype, sub: int) -> jnp.ndarray:
    """Run the kernel over a lane-dense (rows, lanes) slab."""
    rows, lanes = x2d.shape

    # ~1M elements (~4 MiB f32) per operand per grid step; rows a multiple of
    # the dtype's sublane packing (8 for f32, 16 for bf16, ...).
    target_rows = max(sub, (1024 * 1024) // lanes)
    if rows <= target_rows:
        tile_rows = rows  # single full-extent block (allowed by the (8,128) rule)
    else:
        tile_rows = max(sub, (target_rows // sub) * sub)  # partial tail block is OK

    grid = (pl.cdiv(rows, tile_rows),)

    n_el = rows * lanes
    cost = pl.CostEstimate(
        flops=3 * n_el,                # scale, add, multiply per element
        transcendentals=n_el,          # one tanh per element
        bytes_accessed=(x2d.size * x2d.dtype.itemsize
                        + n2d.size * n2d.dtype.itemsize
                        + n_el * jnp.dtype(out_dtype).itemsize),
    )

    return pl.pallas_call(
        _smask_kernel,
        out_shape=jax.ShapeDtypeStruct((rows, lanes), out_dtype),
        grid_spec=pltpu.PrefetchScalarGridSpec(
            num_scalar_prefetch=0,
            grid=grid,
            in_specs=[
                pl.BlockSpec((tile_rows, lanes), lambda i: (i, 0)),
                pl.BlockSpec((tile_rows, lanes), lambda i: (i, 0)),
            ],
            out_specs=pl.BlockSpec((tile_rows, lanes), lambda i: (i, 0)),
        ),
        compiler_params=pltpu.CompilerParams(
            dimension_semantics=("parallel",),
            vmem_limit_bytes=48 * 1024 * 1024,   # explicit: v5e default is only 16 MiB
            allow_input_fusion=[True, True],     # let producers of x/noisy fuse in
        ),
        cost_estimate=cost,
    )(x2d, n2d)


def smask_forward(x: jnp.ndarray, noisy: jnp.ndarray) -> jnp.ndarray:
    """JAX/Pallas equivalent of SMask.forward(x, noisy) = sigmoid(x) * noisy."""
    if x.shape != noisy.shape:
        # TODO(synk): keep the smaller operand unblocked (same-block index_map)
        # instead of materializing the broadcast; rare for this module.
        x, noisy = jnp.broadcast_arrays(x, noisy)

    out_dtype = jnp.result_type(x.dtype, noisy.dtype)
    orig_shape = x.shape
    n = x.size
    if n == 0:
        return jnp.zeros(orig_shape, out_dtype)

    # Sublane packing multiple: f32 -> 8 rows/vreg, bf16/f16 -> 16, int8/fp8 -> 32.
    itemsize = min(jnp.dtype(x.dtype).itemsize, jnp.dtype(noisy.dtype).itemsize)
    sub = 8 * max(1, 4 // max(1, itemsize))

    xf = x.reshape(-1)
    nf = noisy.reshape(-1)

    lanes = _pick_lane_width(n)
    if lanes:
        # Common path: reshape is metadata-only, no extra HBM copies.
        y2d = _smask_2d(xf.reshape(-1, lanes), nf.reshape(-1, lanes), out_dtype, sub)
        return y2d.reshape(orig_shape)

    # Ragged total size: kernel on the 128-aligned bulk, plain JAX on the
    # (<128 element) tail -- avoids the ~2x HBM traffic of pad + slice.
    bulk = (n // 128) * 128
    parts = []
    if bulk:
        lanes_b = _pick_lane_width(bulk)
        yb = _smask_2d(xf[:bulk].reshape(-1, lanes_b),
                       nf[:bulk].reshape(-1, lanes_b),
                       out_dtype, sub).reshape(-1)
        parts.append(yb)
    xt = xf[bulk:].astype(jnp.float32)
    nt = nf[bulk:].astype(jnp.float32)
    yt = (0.5 * (jnp.tanh(0.5 * xt) + 1.0) * nt).astype(out_dtype)
    parts.append(yt)
    return jnp.concatenate(parts).reshape(orig_shape)


if __name__ == "__main__":
    key = jax.random.PRNGKey(0)
    kx, kn = jax.random.split(key)
    # Small spectrogram-style NCHW inputs.
    x = jax.random.normal(kx, (2, 4, 16, 16), dtype=jnp.float32)
    noisy = jax.random.normal(kn, (2, 4, 16, 16), dtype=jnp.float32)

    y = smask_forward(x, noisy)
    y = jax.block_until_ready(y)

    ref = jax.nn.sigmoid(x) * noisy
    assert y.shape == ref.shape and y.dtype == ref.dtype
    # tanh-form sigmoid differs from exp-form by a few f32 ULPs -> 1e-5 tol.
    assert bool(jnp.allclose(y, ref, rtol=1e-5, atol=1e-5))
    print("KERNEL_OK")
</pallas_src>

<mosaic_0001>
module attributes {stable_mosaic.version = 11 : i64} {
  func.func @_smask_kernel(%arg0: i32, %arg1: memref<1x2048xf32, #tpu.memory_space<vmem>>, %arg2: memref<1x2048xf32, #tpu.memory_space<vmem>>, %arg3: memref<1x2048xf32, #tpu.memory_space<vmem>>) attributes {dimension_semantics = [#tpu.dimension_semantics<parallel>], iteration_bounds = array<i64: 1>, scalar_prefetch = 0 : i64, scratch_operands = 0 : i64, tpu.core_type = #tpu.core_type<tc>, window_params = [{transform_indices = @transform_0, window_bounds = array<i64: 1, 2048>}, {transform_indices = @transform_1, window_bounds = array<i64: 1, 2048>}, {transform_indices = @transform_2, window_bounds = array<i64: 1, 2048>}]} {
    %c0 = arith.constant 0 : index
    %c0_0 = arith.constant 0 : index
    %0 = vector.load %arg1[%c0, %c0_0] : memref<1x2048xf32, #tpu.memory_space<vmem>>, vector<1x2048xf32>
    %c0_1 = arith.constant 0 : index
    %c0_2 = arith.constant 0 : index
    %1 = vector.load %arg2[%c0_1, %c0_2] : memref<1x2048xf32, #tpu.memory_space<vmem>>, vector<1x2048xf32>
    %cst = arith.constant 5.000000e-01 : f32
    %2 = vector.broadcast %cst : f32 to vector<1x2048xf32>
    %3 = arith.mulf %2, %0 : vector<1x2048xf32>
    %4 = math.tanh %3 : vector<1x2048xf32>
    %cst_3 = arith.constant 1.000000e+00 : f32
    %5 = vector.broadcast %cst_3 : f32 to vector<1x2048xf32>
    %6 = arith.addf %4, %5 : vector<1x2048xf32>
    %cst_4 = arith.constant 5.000000e-01 : f32
    %7 = vector.broadcast %cst_4 : f32 to vector<1x2048xf32>
    %8 = arith.mulf %7, %6 : vector<1x2048xf32>
    %9 = arith.mulf %8, %1 : vector<1x2048xf32>
    %c0_5 = arith.constant 0 : index
    %c0_6 = arith.constant 0 : index
    %10 = vector.load %arg3[%c0_5, %c0_6] : memref<1x2048xf32, #tpu.memory_space<vmem>>, vector<1x2048xf32>
    tpu.vector_store %arg3[%c0_5, %c0_6], %9 {strides = array<i32>} : memref<1x2048xf32, #tpu.memory_space<vmem>>, vector<1x2048xf32>,
    return
  }
  func.func @transform_0(%arg0: i32) -> (i32, i32) {
    %c0_i32 = arith.constant 0 : i32
    %c0_i32_0 = arith.constant 0 : i32
    return %arg0, %c0_i32 : i32, i32
  }
  func.func @transform_1(%arg0: i32) -> (i32, i32) {
    %c0_i32 = arith.constant 0 : i32
    %c0_i32_0 = arith.constant 0 : i32
    return %arg0, %c0_i32 : i32, i32
  }
  func.func @transform_2(%arg0: i32) -> (i32, i32) {
    %c0_i32 = arith.constant 0 : i32
    %c0_i32_0 = arith.constant 0 : i32
    return %arg0, %c0_i32 : i32, i32
  }
}

</mosaic_0001>

<bundles_post_ra>
// kernel: tpu_custom_call.1
= control target key start
LH: loop header
LB: loop body
LE: loop exit
PB: predicated region body
PF: predicated region fallthrough
CT: control target
= control target key end

     0   :  { %7 = vsyncpa [#allocation3], 0  ;;  %s201_s0 = inlined_call_operand.hbm [shape: f32[1,2048], index: 0, kind: input, shape index: {}]   ;;  %s202_s1 = inlined_call_operand.hbm [shape: f32[1,2048], index: 1, kind: input, shape index: {}]   ;;  %s203_s2 = inlined_call_operand.hbm [shape: f32[1,2048], index: 2, kind: output, shape index: {}]  }
   0x1   :  { %8 = vsyncpa [#allocation6], 0 }
   0x2   :  { %9 = vsyncpa [#allocation4], 0  ;;  %s147_s9 = smov [#allocation2]   ;;  %s148_s11 = smov [#allocation5]  }
   0x3   :  { %s16_s10 = sshll.u32 %s147_s9, 4  ;;  %s26_s12 = sshll.u32 %s148_s11, 4  ;;  %s17_s10 = int_to_ptr.vmem [resolvable:$true] %s16_s10  ;;  %s27_s12 = int_to_ptr.vmem [resolvable:$true] %s26_s12 }
   0x4   :  { %s75_s15 = scalar_lea.hbm %s201_s0, 256 }
   0x5   :  { %p76_p0 = scmp.ne.s32.totalorder %s201_s0, %s75_s15  ;;  %p79_p1 = scmp.lt.u32.totalorder %s75_s15, %s201_s0 }
   0x7   :  { %p81_p2 = pnand %p79_p1, %p76_p0 }
   0x9   :  { %84 = shalt.err (!%p81_p2)
}
   0xa   :  { %s85_s20 = scalar_lea.vmem %s17_s10, 256  ;;  %p90_p4 = scmp.lt.s32.totalorder %s17_s10, %s17_s10 }
   0xb   :  { %p86_p3 = scmp.ne.s32.totalorder %s17_s10, %s85_s20  ;;  %p91_p5 = scmp.lt.s32.totalorder %s85_s20, %s85_s20 }
   0xd   :  { %p92_p6 = por %p91_p5, %p90_p4 }
   0xf   :  { %p93_p7 = pnand %p92_p6, %p86_p3 }
  0x11   :  { %96 = shalt.err (!%p93_p7)
}
  0x12   :  { %19 = dma.hbm_to_vmem [thread:$0]  %s201_s0, 256, %s17_s10, [#allocation3]  }
  0x13   :  { %s97_s25 = scalar_lea.hbm %s202_s1, 256 }
  0x14   :  { %p98_p8 = scmp.ne.s32.totalorder %s202_s1, %s97_s25  ;;  %p101_p9 = scmp.lt.u32.totalorder %s97_s25, %s202_s1 }
  0x16   :  { %p103_p10 = pnand %p101_p9, %p98_p8 }
  0x18   :  { %106 = shalt.err (!%p103_p10)
}
  0x19   :  { %s107_s30 = scalar_lea.vmem %s27_s12, 256  ;;  %p112_p12 = scmp.lt.s32.totalorder %s27_s12, %s27_s12 }
  0x1a   :  { %p108_p11 = scmp.ne.s32.totalorder %s27_s12, %s107_s30  ;;  %p113_p13 = scmp.lt.s32.totalorder %s107_s30, %s107_s30 }
  0x1c   :  { %p114_p0 = por %p113_p13, %p112_p12 }
  0x1e   :  { %p115_p1 = pnand %p114_p0, %p108_p11 }
  0x20   :  { %118 = shalt.err (!%p115_p1)
}
  0x21   :  { %29 = dma.hbm_to_vmem [thread:$0]  %s202_s1, 256, %s27_s12, [#allocation6]  }
  0x22   :  { %141 = dma.done.wait [#allocation3], 256  }
  0x23   :  { %142 = vsyncadd [#allocation3], 4294967040 }
  0x24   :  { %143 = dma.done.wait [#allocation6], 256  }
  0x25   :  { %144 = vsyncadd [#allocation6], 4294967040  ;;  %v36_v0 = vld [vmem:[#allocation2] sm:$0xff]  ;;  %v37_v1 = vld [vmem:[#allocation2 + $0x8] sm:$0xff]  ;;  %s149_s4 = smov [#allocation7]  }
  0x26   :  { %v40_v2 = vmul.f32 0.5, %v36_v0  ;;  %v41_v3 = vmul.f32 0.5, %v37_v1  ;;  %v38_v7 = vld [vmem:[#allocation5] sm:$0xff]  ;;  %v39_v10 = vld [vmem:[#allocation5 + $0x8] sm:$0xff]  ;;  %s58_s5 = sshll.u32 %s149_s4, 4  ;;  %s59_s5 = int_to_ptr.vmem [resolvable:$true] %s58_s5 }
  0x27   :  { %s119_s1 = scalar_lea.vmem %s59_s5, 256  ;;  %p124_p3 = scmp.lt.s32.totalorder %s59_s5, %s59_s5 }
  0x28   :  { %71 = vtanh.f32 %v40_v2  ;;  %p120_p2 = scmp.ne.s32.totalorder %s59_s5, %s119_s1  ;;  %p125_p4 = scmp.lt.s32.totalorder %s119_s1, %s119_s1 }
  0x29   :  { %73 = vtanh.f32 %v41_v3 }
  0x2a   :  { %p126_p5 = por %p125_p4, %p124_p3 }
  0x2c   :  { %p127_p6 = pnand %p126_p5, %p120_p2 }
  0x32   :  { %v72_v4 = vpop.eup %71 }
  0x33   :  { %v74_v5 = vpop.eup %73  ;;  %v44_v6 = vadd.f32 1.0, %v72_v4 }
  0x34   :  { %v45_v8 = vadd.f32 1.0, %v74_v5 }
  0x35   :  { %v46_v9 = vmul.f32 0.5, %v44_v6 }
  0x36   :  { %v47_v11 = vmul.f32 0.5, %v45_v8 }
  0x37   :  { %v48_v12 = vmul.f32 %v46_v9, %v38_v7 }
  0x38   :  { %v49_v13 = vmul.f32 %v47_v11, %v39_v10 }
  0x39   :  { %50 = vst [vmem:[#allocation7] sm:$0xff] %v48_v12 }
  0x3a   :  { %51 = vst [vmem:[#allocation7 + $0x8] sm:$0xff] %v49_v13 }
  0x3b   :  { %130 = shalt.err (!%p127_p6)
}
  0x3c   :  { %s131_s8 = scalar_lea.hbm %s203_s2, 256 }
  0x3d   :  { %p132_p7 = scmp.ne.s32.totalorder %s203_s2, %s131_s8  ;;  %p135_p8 = scmp.lt.u32.totalorder %s131_s8, %s203_s2 }
  0x3f   :  { %p137_p9 = pnand %p135_p8, %p132_p7 }
  0x41   :  { %140 = shalt.err (!%p137_p9)
}
  0x42   :  { %61 = dma.vmem_to_hbm [thread:$0]  %s59_s5, 256, %s203_s2, [#allocation4]  }
  0x43   :  { %145 = dma.done.wait [#allocation4], 256  }
  0x44   :  { %146 = vsyncadd [#allocation4], 4294967040 }
  0x45   :  { %65 = vsyncpa [#allocation3], 1 }
  0x46   :  { %66 = vsyncpa [#allocation6], 1 }
  0x47   :  { %67 = vsyncpa [#allocation4], 1 }

</bundles_post_ra>
